<compile_context>
chip_gen: v7x
topology: tpu7x:2x2x1
jax: 0.10.0
libtpu: 0.0.40
codegen_flags: <defaults>
</compile_context>

<pallas_src>
import functools

import jax
import jax.numpy as jnp
from jax.experimental import pallas as pl
from jax.experimental.pallas import tpu as pltpu


def _round_up(n, m):
    return ((n + m - 1) // m) * m


def _num_tensorcores():
    """2 on v7x (2 TensorCores/chip), else 1.  Defensive: any failure -> 1."""
    try:
        kind = jax.devices()[0].device_kind.lower()
        return 2 if "v7" in kind else 1
    except Exception:  # pragma: no cover
        return 1


def _pick_batch_tile(batch, requested, num_tc):
    """Multiple of 128, capped at the (padded) batch.

    Only forces multiple grid steps when there are multiple TensorCores to
    feed (v7x).  On single-core v5e/v6e the grid is a serial loop, so
    splitting a single-tile batch would only add step overhead + padded work.
    """
    bt = max(128, min(_round_up(requested, 128), _round_up(batch, 128)))
    if num_tc > 1 and batch > 128 * num_tc and _round_up(batch, bt) // bt < num_tc:
        bt = max(128, _round_up(-(-batch // num_tc), 128))
    return bt


def _discriminator_kernel(x_ref, w1_ref, b1_ref, w2_ref, b2_ref, w3_ref, b3_ref,
                          o_ref):
    # Cast the (bt, input_dim) f32 tile to bf16 in-kernel (cheap VPU work that
    # pipelines with everything else; avoids a separate XLA cast+copy in HBM).
    x = x_ref[...].astype(jnp.bfloat16)                               # (bt, in)

    # Linear(input_dim, 256) + LeakyReLU(0.02) -- bf16 MXU, f32 accumulate.
    h1 = jnp.dot(x, w1_ref[...], preferred_element_type=jnp.float32) + b1_ref[...]
    h1 = jnp.maximum(h1, 0.02 * h1)

    # Linear(256, 256) + LeakyReLU(0.02) -- bf16 MXU, f32 accumulate.
    h2 = jnp.dot(h1.astype(jnp.bfloat16), w2_ref[...],
                 preferred_element_type=jnp.float32) + b2_ref[...]
    h2 = jnp.maximum(h2, 0.02 * h2)

    # Linear(256, 1): an N=1 MXU matmul wastes the MXU; keep it as an f32 VPU
    # multiply + XLU lane reduction (exact f32 numerics for the last layer).
    h3 = jnp.sum(h2 * w3_ref[...], axis=-1, keepdims=True) + b3_ref[...]

    # Sigmoid without a VPU divide: sigmoid(x) = 0.5 * (tanh(x/2) + 1)  (EUP).
    o_ref[...] = (0.5 * (jnp.tanh(0.5 * h3) + 1.0)).astype(o_ref.dtype)


def prepare_params(params):
    """One-time (outside-jit) dtype/layout prep of the parameters.

    Returns (w1_bf16, b1(1,H) f32, w2_bf16, b2(1,H) f32, w3_row(1,H) f32,
    b3(1,1) f32) so the jitted forward issues no per-call weight casts.
    """
    w1, b1, w2, b2, w3, b3 = params
    hidden = w1.shape[1]
    return (
        w1.astype(jnp.bfloat16),
        b1.reshape(1, hidden).astype(jnp.float32),
        w2.astype(jnp.bfloat16),
        b2.reshape(1, hidden).astype(jnp.float32),
        w3.reshape(1, hidden).astype(jnp.float32),
        b3.reshape(1, 1).astype(jnp.float32),
    )


@functools.partial(jax.jit, static_argnames=("batch_tile",))
def discriminator_forward(x, prepared_params, *, batch_tile=4096):
    """x: (B, input_dim) float32 -> (B, 1) float32 (sigmoid probabilities)."""
    w1_bf, b1_2d, w2_bf, b2_2d, w3_row, b3_2d = prepared_params
    B, input_dim = x.shape
    hidden = w1_bf.shape[1]

    bt = _pick_batch_tile(B, batch_tile, _num_tensorcores())
    Bp = _round_up(B, bt)
    grid = (Bp // bt,)

    x_in = x
    if Bp != B:  # pad only when the batch does not divide the tile
        x_in = jnp.pad(x, ((0, Bp - B), (0, 0)))

    out = pl.pallas_call(
        _discriminator_kernel,
        out_shape=jax.ShapeDtypeStruct((Bp, 1), jnp.float32),
        grid_spec=pltpu.PrefetchScalarGridSpec(
            num_scalar_prefetch=0,
            grid=grid,
            in_specs=[
                pl.BlockSpec((bt, input_dim), lambda i: (i, 0)),      # x (f32)
                pl.BlockSpec((input_dim, hidden), lambda i: (0, 0)),  # w1 (bf16)
                pl.BlockSpec((1, hidden), lambda i: (0, 0)),          # b1 (f32)
                pl.BlockSpec((hidden, hidden), lambda i: (0, 0)),     # w2 (bf16)
                pl.BlockSpec((1, hidden), lambda i: (0, 0)),          # b2 (f32)
                pl.BlockSpec((1, hidden), lambda i: (0, 0)),          # w3 row (f32)
                pl.BlockSpec((1, 1), lambda i: (0, 0)),               # b3 (f32)
            ],
            out_specs=pl.BlockSpec((bt, 1), lambda i: (i, 0)),
        ),
        compiler_params=pltpu.CompilerParams(
            dimension_semantics=("parallel",),
            # bt=4096 -> ~15 MiB live (f32 h1/h2 + double-buffered f32 x tile
            # + <200 KiB of weights); 48 MiB is safe on every generation
            # (v7x physical VMEM is 64 MiB) and well above v5e's 16 MiB
            # scoped default.
            vmem_limit_bytes=48 * 1024 * 1024,
        ),
    )(x_in, w1_bf, b1_2d, w2_bf, b2_2d, w3_row, b3_2d)

    return out[:B]


def init_params(key, input_dim, hidden=256):
    """Deterministic synthetic parameters (PyTorch-like uniform init), f32.
    Weights are stored as (in_features, out_features)."""
    ks = jax.random.split(key, 6)

    def lin(kw, kb, fan_in, fan_out):
        bound = 1.0 / jnp.sqrt(fan_in)
        w = jax.random.uniform(kw, (fan_in, fan_out), jnp.float32, -bound, bound)
        b = jax.random.uniform(kb, (fan_out,), jnp.float32, -bound, bound)
        return w, b

    w1, b1 = lin(ks[0], ks[1], input_dim, hidden)
    w2, b2 = lin(ks[2], ks[3], hidden, hidden)
    w3, b3 = lin(ks[4], ks[5], hidden, 1)
    return (w1, b1, w2, b2, w3, b3)


def reference_forward(x, params):
    """Precision-matched reference: bf16 matmuls with f32 accumulation,
    f32 activations, f32 final layer, exact sigmoid."""
    w1, b1, w2, b2, w3, b3 = params
    h1 = jnp.dot(x.astype(jnp.bfloat16), w1.astype(jnp.bfloat16),
                 preferred_element_type=jnp.float32) + b1[None, :]
    h1 = jnp.maximum(h1, 0.02 * h1)
    h2 = jnp.dot(h1.astype(jnp.bfloat16), w2.astype(jnp.bfloat16),
                 preferred_element_type=jnp.float32) + b2[None, :]
    h2 = jnp.maximum(h2, 0.02 * h2)
    h3 = jnp.sum(h2 * w3.reshape(1, -1), axis=-1, keepdims=True) + b3.reshape(1, 1)
    return jax.nn.sigmoid(h3)


if __name__ == "__main__":
    key = jax.random.PRNGKey(0)
    k_x, k_x2, k_p = jax.random.split(key, 3)

    input_dim = 32
    params = init_params(k_p, input_dim, hidden=256)
    prepared = prepare_params(params)   # one-time, outside the jit

    # Small primary check (single tile, padded batch).
    x = jax.random.normal(k_x, (8, input_dim), jnp.float32)
    out = jax.block_until_ready(discriminator_forward(x, prepared))
    ref = reference_forward(x, params)
    assert out.shape == (8, 1)
    assert jnp.allclose(out, ref, atol=2e-3), "mismatch vs reference (small batch)"

    # Non-divisible batch (exercises padding; splits into 2 tiles only on v7x).
    x2 = jax.random.normal(k_x2, (300, input_dim), jnp.float32)
    out2 = jax.block_until_ready(discriminator_forward(x2, prepared))
    ref2 = reference_forward(x2, params)
    assert out2.shape == (300, 1)
    assert jnp.allclose(out2, ref2, atol=2e-3), "mismatch vs reference (padded batch)"

    print("KERNEL_OK")
</pallas_src>

<mosaic_0001>
module attributes {stable_mosaic.version = 11 : i64} {
  func.func @_discriminator_kernel(%arg0: i32, %arg1: memref<128x32xf32, #tpu.memory_space<vmem>>, %arg2: memref<32x256xbf16, #tpu.memory_space<vmem>>, %arg3: memref<1x256xf32, #tpu.memory_space<vmem>>, %arg4: memref<256x256xbf16, #tpu.memory_space<vmem>>, %arg5: memref<1x256xf32, #tpu.memory_space<vmem>>, %arg6: memref<1x256xf32, #tpu.memory_space<vmem>>, %arg7: memref<1x1xf32, #tpu.memory_space<vmem>>, %arg8: memref<128x1xf32, #tpu.memory_space<vmem>>) attributes {dimension_semantics = [#tpu.dimension_semantics<parallel>], iteration_bounds = array<i64: 1>, scalar_prefetch = 0 : i64, scratch_operands = 0 : i64, tpu.core_type = #tpu.core_type<tc>, window_params = [{transform_indices = @transform_0, window_bounds = array<i64: 128, 32>}, {pipeline_mode = #tpu.pipeline_mode<synchronous>, transform_indices = @transform_1, window_bounds = array<i64: 32, 256>}, {pipeline_mode = #tpu.pipeline_mode<synchronous>, transform_indices = @transform_2, window_bounds = array<i64: 1, 256>}, {pipeline_mode = #tpu.pipeline_mode<synchronous>, transform_indices = @transform_3, window_bounds = array<i64: 256, 256>}, {pipeline_mode = #tpu.pipeline_mode<synchronous>, transform_indices = @transform_4, window_bounds = array<i64: 1, 256>}, {pipeline_mode = #tpu.pipeline_mode<synchronous>, transform_indices = @transform_5, window_bounds = array<i64: 1, 256>}, {pipeline_mode = #tpu.pipeline_mode<synchronous>, transform_indices = @transform_6, window_bounds = array<i64: 1, 1>}, {transform_indices = @transform_7, window_bounds = array<i64: 128, 1>}]} {
    %c0 = arith.constant 0 : index
    %c0_0 = arith.constant 0 : index
    %0 = vector.load %arg1[%c0, %c0_0] : memref<128x32xf32, #tpu.memory_space<vmem>>, vector<128x32xf32>
    %1 = arith.truncf %0 : vector<128x32xf32> to vector<128x32xbf16>
    %c0_1 = arith.constant 0 : index
    %c0_2 = arith.constant 0 : index
    %2 = vector.load %arg2[%c0_1, %c0_2] : memref<32x256xbf16, #tpu.memory_space<vmem>>, vector<32x256xbf16>
    %cst = arith.constant dense<0.000000e+00> : vector<128x256xf32>
    %3 = tpu.matmul %1, %2, %cst {dimension_numbers = #tpu.dot_dimension_numbers<[1], [0], [0], [1], [0, 0, 1, 1], [], []>} : vector<128x32xbf16>, vector<32x256xbf16>, vector<128x256xf32> -> vector<128x256xf32>
    %c0_3 = arith.constant 0 : index
    %c0_4 = arith.constant 0 : index
    %4 = vector.load %arg3[%c0_3, %c0_4] : memref<1x256xf32, #tpu.memory_space<vmem>>, vector<1x256xf32>
    %5 = vector.broadcast %4 : vector<1x256xf32> to vector<128x256xf32>
    %6 = arith.addf %3, %5 : vector<128x256xf32>
    %cst_5 = arith.constant 2.000000e-02 : f32
    %7 = vector.broadcast %cst_5 : f32 to vector<128x256xf32>
    %8 = arith.mulf %7, %6 : vector<128x256xf32>
    %9 = arith.maximumf %6, %8 : vector<128x256xf32>
    %10 = arith.truncf %9 : vector<128x256xf32> to vector<128x256xbf16>
    %c0_6 = arith.constant 0 : index
    %c0_7 = arith.constant 0 : index
    %11 = vector.load %arg4[%c0_6, %c0_7] : memref<256x256xbf16, #tpu.memory_space<vmem>>, vector<256x256xbf16>
    %cst_8 = arith.constant dense<0.000000e+00> : vector<128x256xf32>
    %12 = tpu.matmul %10, %11, %cst_8 {dimension_numbers = #tpu.dot_dimension_numbers<[1], [0], [0], [1], [0, 0, 1, 1], [], []>} : vector<128x256xbf16>, vector<256x256xbf16>, vector<128x256xf32> -> vector<128x256xf32>
    %c0_9 = arith.constant 0 : index
    %c0_10 = arith.constant 0 : index
    %13 = vector.load %arg5[%c0_9, %c0_10] : memref<1x256xf32, #tpu.memory_space<vmem>>, vector<1x256xf32>
    %14 = vector.broadcast %13 : vector<1x256xf32> to vector<128x256xf32>
    %15 = arith.addf %12, %14 : vector<128x256xf32>
    %cst_11 = arith.constant 2.000000e-02 : f32
    %16 = vector.broadcast %cst_11 : f32 to vector<128x256xf32>
    %17 = arith.mulf %16, %15 : vector<128x256xf32>
    %18 = arith.maximumf %15, %17 : vector<128x256xf32>
    %c0_12 = arith.constant 0 : index
    %c0_13 = arith.constant 0 : index
    %19 = vector.load %arg6[%c0_12, %c0_13] : memref<1x256xf32, #tpu.memory_space<vmem>>, vector<1x256xf32>
    %20 = vector.broadcast %19 : vector<1x256xf32> to vector<128x256xf32>
    %21 = arith.mulf %18, %20 : vector<128x256xf32>
    %cst_14 = arith.constant dense<0.000000e+00> : vector<128xf32>
    %22 = vector.multi_reduction <add>, %21, %cst_14 [1] : vector<128x256xf32> to vector<128xf32>
    %23 = vector.shape_cast %22 : vector<128xf32> to vector<128x1xf32>
    %c0_15 = arith.constant 0 : index
    %c0_16 = arith.constant 0 : index
    %24 = vector.load %arg7[%c0_15, %c0_16] : memref<1x1xf32, #tpu.memory_space<vmem>>, vector<1x1xf32>
    %25 = vector.broadcast %24 : vector<1x1xf32> to vector<128x1xf32>
    %26 = arith.addf %23, %25 : vector<128x1xf32>
    %cst_17 = arith.constant 5.000000e-01 : f32
    %27 = vector.broadcast %cst_17 : f32 to vector<128x1xf32>
    %28 = arith.mulf %27, %26 : vector<128x1xf32>
    %29 = math.tanh %28 : vector<128x1xf32>
    %cst_18 = arith.constant 1.000000e+00 : f32
    %30 = vector.broadcast %cst_18 : f32 to vector<128x1xf32>
    %31 = arith.addf %29, %30 : vector<128x1xf32>
    %cst_19 = arith.constant 5.000000e-01 : f32
    %32 = vector.broadcast %cst_19 : f32 to vector<128x1xf32>
    %33 = arith.mulf %32, %31 : vector<128x1xf32>
    %c0_20 = arith.constant 0 : index
    %c0_21 = arith.constant 0 : index
    %34 = vector.load %arg8[%c0_20, %c0_21] : memref<128x1xf32, #tpu.memory_space<vmem>>, vector<128x1xf32>
    tpu.vector_store %arg8[%c0_20, %c0_21], %33 {strides = array<i32>} : memref<128x1xf32, #tpu.memory_space<vmem>>, vector<128x1xf32>,
    return
  }
  func.func @transform_0(%arg0: i32) -> (i32, i32) {
    %c0_i32 = arith.constant 0 : i32
    %c0_i32_0 = arith.constant 0 : i32
    return %arg0, %c0_i32 : i32, i32
  }
  func.func @transform_1(%arg0: i32) -> (i32, i32) {
    %c0_i32 = arith.constant 0 : i32
    %c0_i32_0 = arith.constant 0 : i32
    %c0_i32_1 = arith.constant 0 : i32
    return %c0_i32, %c0_i32_0 : i32, i32
  }
  func.func @transform_2(%arg0: i32) -> (i32, i32) {
    %c0_i32 = arith.constant 0 : i32
    %c0_i32_0 = arith.constant 0 : i32
    %c0_i32_1 = arith.constant 0 : i32
    return %c0_i32, %c0_i32_0 : i32, i32
  }
  func.func @transform_3(%arg0: i32) -> (i32, i32) {
    %c0_i32 = arith.constant 0 : i32
    %c0_i32_0 = arith.constant 0 : i32
    %c0_i32_1 = arith.constant 0 : i32
    return %c0_i32, %c0_i32_0 : i32, i32
  }
  func.func @transform_4(%arg0: i32) -> (i32, i32) {
    %c0_i32 = arith.constant 0 : i32
    %c0_i32_0 = arith.constant 0 : i32
    %c0_i32_1 = arith.constant 0 : i32
    return %c0_i32, %c0_i32_0 : i32, i32
  }
  func.func @transform_5(%arg0: i32) -> (i32, i32) {
    %c0_i32 = arith.constant 0 : i32
    %c0_i32_0 = arith.constant 0 : i32
    %c0_i32_1 = arith.constant 0 : i32
    return %c0_i32, %c0_i32_0 : i32, i32
  }
  func.func @transform_6(%arg0: i32) -> (i32, i32) {
    %c0_i32 = arith.constant 0 : i32
    %c0_i32_0 = arith.constant 0 : i32
    %c0_i32_1 = arith.constant 0 : i32
    return %c0_i32, %c0_i32_0 : i32, i32
  }
  func.func @transform_7(%arg0: i32) -> (i32, i32) {
    %c0_i32 = arith.constant 0 : i32
    %c0_i32_0 = arith.constant 0 : i32
    return %arg0, %c0_i32 : i32, i32
  }
}

</mosaic_0001>

<bundles_post_ra>
// kernel: discriminator_forward.1
= control target key start
LH: loop header
LB: loop body
LE: loop exit
PB: predicated region body
PF: predicated region fallthrough
CT: control target
= control target key end

     0   :  { %s1438_s0 = inlined_call_operand.vmem [shape: f32[128,32], index: 0, kind: input, shape index: {}]   ;;  %s1439_s1 = inlined_call_operand.vmem [shape: bf16[32,256], index: 1, kind: input, shape index: {}]   ;;  %s1440_s2 = inlined_call_operand.vmem [shape: f32[1,256], index: 2, kind: input, shape index: {}]   ;;  %s1441_s3 = inlined_call_operand.hbm [shape: bf16[256,256], index: 3, kind: input, shape index: {}]   ;;  %s1442_s4 = inlined_call_operand.vmem [shape: f32[1,256], index: 4, kind: input, shape index: {}]   ;;  %s1443_s5 = inlined_call_operand.vmem [shape: f32[1,256], index: 5, kind: input, shape index: {}]   ;;  %s1444_s6 = inlined_call_operand.<no memory space> [shape: f32[1,1], index: 6, kind: input, shape index: {}]   ;;  %s1445_s7 = inlined_call_operand.vmem [shape: f32[128,1], index: 7, kind: output, shape index: {}]  }
   0x1   :  { %v12_v0 = vstv %s1444_s6 }
   0x2   :  { %13 = vst [vmem:[#allocation2] sm:$0x1] %v12_v0 }
   0x3   :  { %14 = vsyncpa [#allocation4], 0  ;;  %s1094_s26 = smov [#allocation3]   ;;  %s1070_s30 = scalar_lea.hbm %s1441_s3, 4096 }
   0x4   :  { %s26_s27 = sshll.u32 %s1094_s26, 4  ;;  %p1071_p0 = scmp.ne.s32.totalorder %s1441_s3, %s1070_s30  ;;  %s27_s27 = int_to_ptr.vmem [resolvable:$true] %s26_s27 }
   0x5   :  { %p1074_p1 = scmp.lt.u32.totalorder %s1070_s30, %s1441_s3 }
   0x7   :  { %p1076_p2 = pnand %p1074_p1, %p1071_p0 }
   0x9   :  { %1079 = shalt.err (!%p1076_p2)
}
   0xa   :  { %s1080_s6 = scalar_lea.vmem %s27_s27, 4096  ;;  %p1085_p4 = scmp.lt.s32.totalorder %s27_s27, %s27_s27 }
   0xb   :  { %p1081_p3 = scmp.ne.s32.totalorder %s27_s27, %s1080_s6  ;;  %p1086_p5 = scmp.lt.s32.totalorder %s1080_s6, %s1080_s6 }
   0xd   :  { %p1087_p6 = por %p1086_p5, %p1085_p4 }
   0xf   :  { %p1088_p7 = pnand %p1087_p6, %p1081_p3 }
  0x11   :  { %1091 = shalt.err (!%p1088_p7)
}
  0x12   :  { %s1095_s12 = smov 128   ;;  %s1096_s13 = smov 8  }
  0x13   :  { %32 = dma.hbm_to_vmem [thread:$0]  %s1441_s3, 4096, %s27_s27, [#allocation4], %s1095_s12, %s1095_s12, %s1096_s13  }
  0x14   :  { %1092 = dma.done.wait [#allocation4], 4096  }
  0x15   :  { %1093 = vsyncadd [#allocation4], 4294963200  ;;  %v1097_v1 = vmov 0   ;;  %v984_v2 = vld [vmem:[%s1439_s1 + $0x4] ss:$8 sps:$4 sm:$0xff]   ;;  %vm103_vm0 = vcmask 261120   ;;  %v73_v62 = vlaneseq }
  0x16   :  { %160 = vmatprep.mubr.bf16.mxu0 %v1097_v1  ;;  %v986_v3 = vld [vmem:[%s1439_s1] ss:$8 sps:$4 sm:$0xff]   ;;  %128 = vmatprep.subr.bf16.mxu0 %v984_v2  ;;  %v987_v4 = vld [vmem:[%s1439_s1 + $0x14] ss:$8 sps:$4 sm:$0xff]   ;;  %v989_v5 = vld [vmem:[%s1439_s1 + $0x10] ss:$8 sps:$4 sm:$0xff]  }
  0x17   :  { %129 = vmatpush1.bf16.msra.mxu0 %v986_v3  ;;  %v43_v6 = vld [vmem:[%s1438_s0] sm:$0xff]  ;;  %v44_v7 = vld [vmem:[%s1438_s0 + $0x8] sm:$0xff]  ;;  %v45_v12 = vld [vmem:[%s1438_s0 + $0x10] sm:$0xff]  ;;  %v74_v63 = vshrl.u32 %v73_v62, 7  ;;  %vm881_vm1 = vcmask 7168  }
  0x18   :  { %130 = vmatprep.subr.bf16.mxu0 %v987_v4  ;;  %v59_v8 = vpack.c.bf16 %v44_v7, %v43_v6  ;;  %v990_v9 = vld [vmem:[#allocation3] ss:$8 sps:$4 sm:$0xff]   ;;  %v992_v10 = vld [vmem:[#allocation3 + $0x4] ss:$8 sps:$4 sm:$0xff]   ;;  %v995_v11 = vld [vmem:[#allocation3 + $0x14] ss:$8 sps:$4 sm:$0xff]  }
  0x19   :  { %v46_v13 = vld [vmem:[%s1438_s0 + $0x18] sm:$0xff]  ;;  %948 = vmatprep.subr.bf16.mxu1 %v992_v10  ;;  %v998_v15 = vld [vmem:[#allocation3 + $0x24] ss:$8 sps:$4 sm:$0xff]   ;;  %v996_v17 = vld [vmem:[#allocation3 + $0x20] ss:$8 sps:$4 sm:$0xff]   ;;  %v1229_v0 = vsub.s32 0, %v74_v63 }
  0x1a   :  { %v993_v14 = vld [vmem:[#allocation3 + $0x10] ss:$8 sps:$4 sm:$0xff]   ;;  %964 = vmatpush1.bf16.msra.mxu1 %v990_v9  ;;  %v60_v16 = vpack.c.bf16 %v46_v13, %v45_v12  ;;  %v1001_v18 = vld [vmem:[#allocation3 + $0x34] ss:$8 sps:$4 sm:$0xff]   ;;  %v48_v20 = vld [vmem:[%s1438_s0 + $0x28] sm:$0xff]  ;;  %v1234_v2 = vsub.s32 1, %v74_v63 }
  0x1b   :  { %131 = vmatpush1.bf16.msra.mxu0 %v989_v5  ;;  %949 = vmatprep.subr.bf16.mxu1 %v995_v11  ;;  %v47_v19 = vld [vmem:[%s1438_s0 + $0x20] sm:$0xff]  ;;  %v999_v21 = vld [vmem:[#allocation3 + $0x30] ss:$8 sps:$4 sm:$0xff]   ;;  %v52_v34 = vld [vmem:[%s1438_s0 + $0x48] sm:$0xff] }
  0x1c   :  { %525 = vmatprep.subr.bf16.mxu0 %v992_v10  ;;  %v1004_v22 = vld [vmem:[#allocation3 + $0x44] ss:$8 sps:$4 sm:$0xff]   ;;  %v61_v23 = vpack.c.bf16 %v48_v20, %v47_v19  ;;  %v1002_v24 = vld [vmem:[#allocation3 + $0x40] ss:$8 sps:$4 sm:$0xff]   ;;  %v1007_v26 = vld [vmem:[#allocation3 + $0x54] ss:$8 sps:$4 sm:$0xff]  }
  0x1d   :  { %v49_v25 = vld [vmem:[%s1438_s0 + $0x30] sm:$0xff]  ;;  %v50_v27 = vld [vmem:[%s1438_s0 + $0x38] sm:$0xff]  ;;  %v1008_v31 = vld [vmem:[#allocation3 + $0x60] ss:$8 sps:$4 sm:$0xff]  }
  0x1e   :  { %907 = vmatmul.mubr.msk.bf16.vlgmr.msra.gmra.mrb[0].mxu0 %vm103_vm0, %v59_v8  ;;  %965 = vmatpush1.bf16.msra.mxu1 %v993_v14  ;;  %v1005_v28 = vld [vmem:[#allocation3 + $0x50] ss:$8 sps:$4 sm:$0xff]   ;;  %v1010_v29 = vld [vmem:[#allocation3 + $0x64] ss:$8 sps:$4 sm:$0xff]   ;;  %v62_v30 = vpack.c.bf16 %v50_v27, %v49_v25  ;;  %v1013_v32 = vld [vmem:[#allocation3 + $0x74] ss:$8 sps:$4 sm:$0xff]  }
  0x1f   :  { %170 = vmatprep.mubr.bf16.mxu0 %v1097_v1  ;;  %526 = vmatpush1.bf16.msra.mxu0 %v990_v9  ;;  %v51_v33 = vld [vmem:[%s1438_s0 + $0x40] sm:$0xff]  ;;  %v1011_v35 = vld [vmem:[#allocation3 + $0x70] ss:$8 sps:$4 sm:$0xff]   ;;  %v56_v48 = vld [vmem:[%s1438_s0 + $0x68] sm:$0xff] }
  0x20   :  { %527 = vmatprep.subr.bf16.mxu0 %v995_v11  ;;  %950 = vmatprep.subr.bf16.mxu1 %v998_v15  ;;  %v1016_v36 = vld [vmem:[#allocation3 + $0x84] ss:$8 sps:$4 sm:$0xff]   ;;  %v63_v37 = vpack.c.bf16 %v52_v34, %v51_v33  ;;  %v1014_v38 = vld [vmem:[#allocation3 + $0x80] ss:$8 sps:$4 sm:$0xff]   ;;  %v1019_v39 = vld [vmem:[#allocation3 + $0x94] ss:$8 sps:$4 sm:$0xff]  }
  0x21   :  { %v53_v40 = vld [vmem:[%s1438_s0 + $0x50] sm:$0xff]  ;;  %v54_v41 = vld [vmem:[%s1438_s0 + $0x58] sm:$0xff]  ;;  %v1020_v45 = vld [vmem:[#allocation3 + $0xa0] ss:$8 sps:$4 sm:$0xff]  }
  0x22   :  { %966 = vmatpush1.bf16.msra.mxu1 %v996_v17  ;;  %v1017_v42 = vld [vmem:[#allocation3 + $0x90] ss:$8 sps:$4 sm:$0xff]   ;;  %v1022_v43 = vld [vmem:[#allocation3 + $0xa4] ss:$8 sps:$4 sm:$0xff]   ;;  %v64_v44 = vpack.c.bf16 %v54_v41, %v53_v40  ;;  %v1025_v46 = vld [vmem:[#allocation3 + $0xb4] ss:$8 sps:$4 sm:$0xff]  }
  0x23   :  { %528 = vmatpush1.bf16.msra.mxu0 %v993_v14  ;;  %951 = vmatprep.subr.bf16.mxu1 %v1001_v18  ;;  %v55_v47 = vld [vmem:[%s1438_s0 + $0x60] sm:$0xff]  ;;  %v1023_v49 = vld [vmem:[#allocation3 + $0xb0] ss:$8 sps:$4 sm:$0xff]  }
  0x24   :  { %529 = vmatprep.subr.bf16.mxu0 %v998_v15  ;;  %v1028_v50 = vld [vmem:[#allocation3 + $0xc4] ss:$8 sps:$4 sm:$0xff]   ;;  %v65_v51 = vpack.c.bf16 %v56_v48, %v55_v47  ;;  %v1026_v52 = vld [vmem:[#allocation3 + $0xc0] ss:$8 sps:$4 sm:$0xff]   ;;  %v58_v54 = vld [vmem:[%s1438_s0 + $0x78] sm:$0xff] }
  0x25   :  { %v57_v53 = vld [vmem:[%s1438_s0 + $0x70] sm:$0xff]  ;;  %v1032_v59 = vld [vmem:[#allocation3 + $0xe0] ss:$8 sps:$4 sm:$0xff]  }
  0x26   :  { %908 = vmatmul.mubr.msk.bf16.gmra.mrb[4].mxu0 %vm103_vm0, %v60_v16  ;;  %967 = vmatpush1.bf16.msra.mxu1 %v999_v21  ;;  %v66_v55 = vpack.c.bf16 %v58_v54, %v57_v53  ;;  %v1031_v56 = vld [vmem:[#allocation3 + $0xd4] ss:$8 sps:$4 sm:$0xff]   ;;  %v1029_v57 = vld [vmem:[#allocation3 + $0xd0] ss:$8 sps:$4 sm:$0xff]   ;;  %v1034_v58 = vld [vmem:[#allocation3 + $0xe4] ss:$8 sps:$4 sm:$0xff]  }
  0x27   :  { %180 = vmatprep.mubr.bf16.mxu0 %v1097_v1  ;;  %530 = vmatpush1.bf16.msra.mxu0 %v996_v17  ;;  %v1037_v60 = vld [vmem:[#allocation3 + $0xf4] ss:$8 sps:$4 sm:$0xff]   ;;  %v1035_v61 = vld [vmem:[#allocation3 + $0xf0] ss:$8 sps:$4 sm:$0xff]  }
  0x28   :  { %531 = vmatprep.subr.bf16.mxu0 %v1001_v18  ;;  %952 = vmatprep.subr.bf16.mxu1 %v1004_v22 }
  0x2a   :  { %968 = vmatpush1.bf16.msra.mxu1 %v1002_v24 }
  0x2b   :  { %532 = vmatpush1.bf16.msra.mxu0 %v999_v21  ;;  %953 = vmatprep.subr.bf16.mxu1 %v1007_v26 }
  0x2c   :  { %533 = vmatprep.subr.bf16.mxu0 %v1004_v22 }
  0x2e   :  { %909 = vmatmul.mubr.msk.bf16.gmra.mrb[8].mxu0 %vm103_vm0, %v61_v23  ;;  %969 = vmatpush1.bf16.msra.mxu1 %v1005_v28 }
  0x2f   :  { %190 = vmatprep.mubr.bf16.mxu0 %v1097_v1  ;;  %534 = vmatpush1.bf16.msra.mxu0 %v1002_v24 }
  0x30   :  { %535 = vmatprep.subr.bf16.mxu0 %v1007_v26  ;;  %954 = vmatprep.subr.bf16.mxu1 %v1010_v29 }
  0x32   :  { %970 = vmatpush1.bf16.msra.mxu1 %v1008_v31 }
  0x33   :  { %536 = vmatpush1.bf16.msra.mxu0 %v1005_v28  ;;  %955 = vmatprep.subr.bf16.mxu1 %v1013_v32 }
  0x34   :  { %537 = vmatprep.subr.bf16.mxu0 %v1010_v29 }
  0x36   :  { %910 = vmatmul.mubr.msk.bf16.gmra.mrb[12].mxu0 %vm103_vm0, %v62_v30  ;;  %971 = vmatpush1.bf16.msra.mxu1 %v1011_v35 }
  0x37   :  { %200 = vmatprep.mubr.bf16.mxu0 %v1097_v1  ;;  %538 = vmatpush1.bf16.msra.mxu0 %v1008_v31 }
  0x38   :  { %539 = vmatprep.subr.bf16.mxu0 %v1013_v32  ;;  %956 = vmatprep.subr.bf16.mxu1 %v1016_v36 }
  0x3a   :  { %972 = vmatpush1.bf16.msra.mxu1 %v1014_v38 }
  0x3b   :  { %540 = vmatpush1.bf16.msra.mxu0 %v1011_v35  ;;  %957 = vmatprep.subr.bf16.mxu1 %v1019_v39 }
  0x3c   :  { %541 = vmatprep.subr.bf16.mxu0 %v1016_v36 }
  0x3e   :  { %911 = vmatmul.mubr.msk.bf16.gmra.mrb[16].mxu0 %vm103_vm0, %v63_v37  ;;  %973 = vmatpush1.bf16.msra.mxu1 %v1017_v42 }
  0x3f   :  { %210 = vmatprep.mubr.bf16.mxu0 %v1097_v1  ;;  %542 = vmatpush1.bf16.msra.mxu0 %v1014_v38 }
  0x40   :  { %543 = vmatprep.subr.bf16.mxu0 %v1019_v39  ;;  %958 = vmatprep.subr.bf16.mxu1 %v1022_v43 }
  0x42   :  { %974 = vmatpush1.bf16.msra.mxu1 %v1020_v45 }
  0x43   :  { %544 = vmatpush1.bf16.msra.mxu0 %v1017_v42  ;;  %959 = vmatprep.subr.bf16.mxu1 %v1025_v46 }
  0x44   :  { %545 = vmatprep.subr.bf16.mxu0 %v1022_v43 }
  0x46   :  { %912 = vmatmul.mubr.msk.bf16.gmra.mrb[20].mxu0 %vm103_vm0, %v64_v44  ;;  %975 = vmatpush1.bf16.msra.mxu1 %v1023_v49 }
  0x47   :  { %220 = vmatprep.mubr.bf16.mxu0 %v1097_v1  ;;  %546 = vmatpush1.bf16.msra.mxu0 %v1020_v45 }
  0x48   :  { %547 = vmatprep.subr.bf16.mxu0 %v1025_v46  ;;  %960 = vmatprep.subr.bf16.mxu1 %v1028_v50 }
  0x4a   :  { %976 = vmatpush1.bf16.msra.mxu1 %v1026_v52 }
  0x4b   :  { %548 = vmatpush1.bf16.msra.mxu0 %v1023_v49  ;;  %961 = vmatprep.subr.bf16.mxu1 %v1031_v56 }
  0x4c   :  { %549 = vmatprep.subr.bf16.mxu0 %v1028_v50 }
  0x4e   :  { %913 = vmatmul.mubr.msk.bf16.gmra.mrb[24].mxu0 %vm103_vm0, %v65_v51  ;;  %977 = vmatpush1.bf16.msra.mxu1 %v1029_v57 }
  0x4f   :  { %230 = vmatprep.mubr.bf16.mxu0 %v1097_v1  ;;  %550 = vmatpush1.bf16.msra.mxu0 %v1026_v52  ;;  %v71_v1 = vld [vmem:[%s1440_s2] sm:$0x3] }
  0x50   :  { %551 = vmatprep.subr.bf16.mxu0 %v1031_v56  ;;  %962 = vmatprep.subr.bf16.mxu1 %v1034_v58  ;;  %v1237_v3 = vrot.slane %v71_v1, %v1229_v0  ;;  %v1240_v4 = vrot.slane %v71_v1, %v1234_v2 }
  0x52   :  { %978 = vmatpush1.bf16.msra.mxu1 %v1032_v59 }
  0x53   :  { %552 = vmatpush1.bf16.msra.mxu0 %v1029_v57  ;;  %963 = vmatprep.subr.bf16.mxu1 %v1037_v60 }
  0x54   :  { %553 = vmatprep.subr.bf16.mxu0 %v1034_v58 }
  0x56   :  { %914 = vmatmul.mubr.msk.bf16.gmra.mrb[28].mxu0 %vm103_vm0, %v66_v55  ;;  %979 = vmatpush1.bf16.msra.mxu1 %v1035_v61 }
  0x57   :  { %554 = vmatpush1.bf16.msra.mxu0 %v1032_v59 }
  0x58   :  { %555 = vmatprep.subr.bf16.mxu0 %v1037_v60 }
  0x5b   :  { %556 = vmatpush1.bf16.msra.mxu0 %v1035_v61 }
  0xf1   :  { %v162_v5 = vpop.f32.mrb[0].mxu0 }
  0xf2   :  { %v163_v6 = vadd.f32 %v162_v5, %v1237_v3  ;;  %v164_v7 = vpop.f32.mrb[1].mxu0 }
  0xf3   :  { %v165_v8 = vadd.f32 %v164_v7, %v1240_v4  ;;  %v166_v9 = vpop.f32.mrb[2].mxu0 }
  0xf4   :  { %v241_v10 = vmul.f32 0.02, %v163_v6  ;;  %v167_v11 = vadd.f32 %v166_v9, %v1237_v3  ;;  %v168_v12 = vpop.f32.mrb[3].mxu0 }
  0xf5   :  { %v242_v13 = vmul.f32 0.02, %v165_v8  ;;  %v169_v14 = vadd.f32 %v168_v12, %v1240_v4 }
  0xf6   :  { %v243_v15 = vmul.f32 0.02, %v167_v11  ;;  %v273_v17 = vmax.f32 %v163_v6, %v241_v10 }
  0xf7   :  { %v244_v16 = vmul.f32 0.02, %v169_v14  ;;  %v274_v19 = vmax.f32 %v165_v8, %v242_v13 }
  0xf8   :  { %v275_v18 = vmax.f32 %v167_v11, %v243_v15 }
  0xf9   :  { %v276_v20 = vmax.f32 %v169_v14, %v244_v16  ;;  %v172_v21 = vpop.f32.mrb[4].mxu0 }
  0xfa   :  { %v305_v22 = vpack.c.bf16 %v275_v18, %v273_v17  ;;  %v173_v23 = vadd.f32 %v172_v21, %v1237_v3  ;;  %v174_v24 = vpop.f32.mrb[5].mxu0 }
  0xfb   :  { %v175_v25 = vadd.f32 %v174_v24, %v1240_v4  ;;  %v176_v26 = vpop.f32.mrb[6].mxu0  ;;  %v306_v27 = vpack.c.bf16 %v276_v20, %v274_v19 }
  0xfc   :  { %v245_v28 = vmul.f32 0.02, %v173_v23  ;;  %v177_v29 = vadd.f32 %v176_v26, %v1237_v3  ;;  %v178_v30 = vpop.f32.mrb[7].mxu0 }
  0xfd   :  { %v246_v31 = vmul.f32 0.02, %v175_v25  ;;  %v179_v32 = vadd.f32 %v178_v30, %v1240_v4  ;;  %557 = vmatprep.mubr.bf16.mxu0 %v306_v27 }
  0xfe   :  { %v247_v33 = vmul.f32 0.02, %v177_v29  ;;  %558 = vmatmul.mubr.bf16.vlgmr.msra.gmra.mrb[32].mxu0 %v305_v22  ;;  %v277_v35 = vmax.f32 %v173_v23, %v245_v28 }
  0xff   :  { %v248_v34 = vmul.f32 0.02, %v179_v32  ;;  %v278_v37 = vmax.f32 %v175_v25, %v246_v31 }
 0x100   :  { %v279_v36 = vmax.f32 %v177_v29, %v247_v33 }
 0x101   :  { %v280_v38 = vmax.f32 %v179_v32, %v248_v34  ;;  %v182_v39 = vpop.f32.mrb[8].mxu0 }
 0x102   :  { %v183_v40 = vadd.f32 %v182_v39, %v1237_v3  ;;  %v184_v41 = vpop.f32.mrb[9].mxu0  ;;  %v307_v42 = vpack.c.bf16 %v279_v36, %v277_v35 }
 0x103   :  { %v185_v43 = vadd.f32 %v184_v41, %v1240_v4  ;;  %v186_v44 = vpop.f32.mrb[10].mxu0  ;;  %v308_v45 = vpack.c.bf16 %v280_v38, %v278_v37 }
 0x104   :  { %v249_v46 = vmul.f32 0.02, %v183_v40  ;;  %v187_v47 = vadd.f32 %v186_v44, %v1237_v3  ;;  %v188_v48 = vpop.f32.mrb[11].mxu0 }
 0x105   :  { %v250_v49 = vmul.f32 0.02, %v185_v43  ;;  %v189_v50 = vadd.f32 %v188_v48, %v1240_v4  ;;  %567 = vmatprep.mubr.bf16.mxu0 %v308_v45 }
 0x106   :  { %v251_v51 = vmul.f32 0.02, %v187_v47  ;;  %568 = vmatmul.mubr.bf16.gmra.mrb[36].mxu0 %v307_v42  ;;  %v281_v53 = vmax.f32 %v183_v40, %v249_v46 }
 0x107   :  { %v252_v52 = vmul.f32 0.02, %v189_v50  ;;  %v282_v55 = vmax.f32 %v185_v43, %v250_v49 }
 0x108   :  { %v283_v54 = vmax.f32 %v187_v47, %v251_v51 }
 0x109   :  { %v284_v56 = vmax.f32 %v189_v50, %v252_v52  ;;  %v192_v57 = vpop.f32.mrb[12].mxu0 }
 0x10a   :  { %v193_v58 = vadd.f32 %v192_v57, %v1237_v3  ;;  %v194_v59 = vpop.f32.mrb[13].mxu0  ;;  %v309_v60 = vpack.c.bf16 %v283_v54, %v281_v53 }
 0x10b   :  { %v195_v61 = vadd.f32 %v194_v59, %v1240_v4  ;;  %v196_v62 = vpop.f32.mrb[14].mxu0  ;;  %v310_v63 = vpack.c.bf16 %v284_v56, %v282_v55 }
 0x10c   :  { %v253_v1 = vmul.f32 0.02, %v193_v58  ;;  %v197_v5 = vadd.f32 %v196_v62, %v1237_v3  ;;  %v198_v6 = vpop.f32.mrb[15].mxu0 }
 0x10d   :  { %v254_v7 = vmul.f32 0.02, %v195_v61  ;;  %v199_v8 = vadd.f32 %v198_v6, %v1240_v4  ;;  %577 = vmatprep.mubr.bf16.mxu0 %v310_v63 }
 0x10e   :  { %v255_v9 = vmul.f32 0.02, %v197_v5  ;;  %578 = vmatmul.mubr.bf16.gmra.mrb[40].mxu0 %v309_v60  ;;  %v285_v11 = vmax.f32 %v193_v58, %v253_v1 }
 0x10f   :  { %v256_v10 = vmul.f32 0.02, %v199_v8  ;;  %v286_v14 = vmax.f32 %v195_v61, %v254_v7 }
 0x110   :  { %v287_v12 = vmax.f32 %v197_v5, %v255_v9 }
 0x111   :  { %v202_v13 = vpop.f32.mrb[16].mxu0  ;;  %v288_v15 = vmax.f32 %v199_v8, %v256_v10 }
 0x112   :  { %v203_v16 = vadd.f32 %v202_v13, %v1237_v3  ;;  %v204_v17 = vpop.f32.mrb[17].mxu0  ;;  %v311_v18 = vpack.c.bf16 %v287_v12, %v285_v11 }
 0x113   :  { %v205_v19 = vadd.f32 %v204_v17, %v1240_v4  ;;  %v206_v20 = vpop.f32.mrb[18].mxu0  ;;  %v312_v21 = vpack.c.bf16 %v288_v15, %v286_v14 }
 0x114   :  { %v257_v22 = vmul.f32 0.02, %v203_v16  ;;  %v207_v23 = vadd.f32 %v206_v20, %v1237_v3  ;;  %v208_v24 = vpop.f32.mrb[19].mxu0 }
 0x115   :  { %v258_v25 = vmul.f32 0.02, %v205_v19  ;;  %v209_v26 = vadd.f32 %v208_v24, %v1240_v4  ;;  %587 = vmatprep.mubr.bf16.mxu1 %v312_v21 }
 0x116   :  { %v259_v27 = vmul.f32 0.02, %v207_v23  ;;  %588 = vmatmul.mubr.bf16.vlgmr.msra.gmra.mrb[0].mxu1 %v311_v18  ;;  %v289_v29 = vmax.f32 %v203_v16, %v257_v22 }
 0x117   :  { %v260_v28 = vmul.f32 0.02, %v209_v26  ;;  %v290_v31 = vmax.f32 %v205_v19, %v258_v25 }
 0x118   :  { %v291_v30 = vmax.f32 %v207_v23, %v259_v27 }
 0x119   :  { %v292_v32 = vmax.f32 %v209_v26, %v260_v28  ;;  %v212_v33 = vpop.f32.mrb[20].mxu0 }
 0x11a   :  { %v213_v34 = vadd.f32 %v212_v33, %v1237_v3  ;;  %v214_v35 = vpop.f32.mrb[21].mxu0  ;;  %v313_v36 = vpack.c.bf16 %v291_v30, %v289_v29 }
 0x11b   :  { %v215_v37 = vadd.f32 %v214_v35, %v1240_v4  ;;  %v216_v38 = vpop.f32.mrb[22].mxu0  ;;  %v314_v39 = vpack.c.bf16 %v292_v32, %v290_v31  ;;  %v702_v31 = vld [vmem:[%s1443_s5] sm:$0x3] }
 0x11c   :  { %v261_v40 = vmul.f32 0.02, %v213_v34  ;;  %v217_v41 = vadd.f32 %v216_v38, %v1237_v3  ;;  %v218_v42 = vpop.f32.mrb[23].mxu0 }
 0x11d   :  { %v262_v43 = vmul.f32 0.02, %v215_v37  ;;  %v219_v44 = vadd.f32 %v218_v42, %v1240_v4  ;;  %597 = vmatprep.mubr.bf16.mxu1 %v314_v39  ;;  %v1290_v39 = vrot.slane %v702_v31, %v1229_v0  ;;  %v1294_v42 = vrot.slane %v702_v31, %v1234_v2 }
 0x11e   :  { %v263_v45 = vmul.f32 0.02, %v217_v41  ;;  %598 = vmatmul.mubr.bf16.gmra.mrb[4].mxu1 %v313_v36  ;;  %v293_v47 = vmax.f32 %v213_v34, %v261_v40 }
 0x11f   :  { %v264_v46 = vmul.f32 0.02, %v219_v44  ;;  %v294_v49 = vmax.f32 %v215_v37, %v262_v43 }
 0x120   :  { %v295_v48 = vmax.f32 %v217_v41, %v263_v45 }
 0x121   :  { %v296_v50 = vmax.f32 %v219_v44, %v264_v46  ;;  %v222_v51 = vpop.f32.mrb[24].mxu0 }
 0x122   :  { %v223_v52 = vadd.f32 %v222_v51, %v1237_v3  ;;  %v224_v53 = vpop.f32.mrb[25].mxu0  ;;  %v315_v54 = vpack.c.bf16 %v295_v48, %v293_v47 }
 0x123   :  { %v225_v55 = vadd.f32 %v224_v53, %v1240_v4  ;;  %v226_v56 = vpop.f32.mrb[26].mxu0  ;;  %v316_v57 = vpack.c.bf16 %v296_v50, %v294_v49 }
 0x124   :  { %v265_v58 = vmul.f32 0.02, %v223_v52  ;;  %v227_v59 = vadd.f32 %v226_v56, %v1237_v3  ;;  %v228_v60 = vpop.f32.mrb[27].mxu0 }
 0x125   :  { %v266_v61 = vmul.f32 0.02, %v225_v55  ;;  %v229_v62 = vadd.f32 %v228_v60, %v1240_v4  ;;  %607 = vmatprep.mubr.bf16.mxu1 %v316_v57 }
 0x126   :  { %v267_v63 = vmul.f32 0.02, %v227_v59  ;;  %608 = vmatmul.mubr.bf16.gmra.mrb[8].mxu1 %v315_v54  ;;  %v297_v5 = vmax.f32 %v223_v52, %v265_v58 }
 0x127   :  { %v268_v1 = vmul.f32 0.02, %v229_v62  ;;  %v298_v7 = vmax.f32 %v225_v55, %v266_v61 }
 0x128   :  { %v299_v6 = vmax.f32 %v227_v59, %v267_v63 }
 0x129   :  { %v300_v8 = vmax.f32 %v229_v62, %v268_v1  ;;  %v232_v9 = vpop.f32.mrb[28].mxu0 }
 0x12a   :  { %v233_v10 = vadd.f32 %v232_v9, %v1237_v3  ;;  %v234_v11 = vpop.f32.mrb[29].mxu0  ;;  %v317_v12 = vpack.c.bf16 %v299_v6, %v297_v5 }
 0x12b   :  { %v235_v13 = vadd.f32 %v234_v11, %v1240_v4  ;;  %v236_v14 = vpop.f32.mrb[30].mxu0  ;;  %v318_v15 = vpack.c.bf16 %v300_v8, %v298_v7 }
 0x12c   :  { %v269_v16 = vmul.f32 0.02, %v233_v10  ;;  %v237_v17 = vadd.f32 %v236_v14, %v1237_v3  ;;  %v238_v18 = vpop.f32.mrb[31].mxu0  ;;  %v353_v3 = vld [vmem:[%s1442_s4] sm:$0x3] }
 0x12d   :  { %v270_v19 = vmul.f32 0.02, %v235_v13  ;;  %v239_v20 = vadd.f32 %v238_v18, %v1240_v4  ;;  %617 = vmatprep.mubr.bf16.mxu1 %v318_v15  ;;  %v1278_v29 = vrot.slane %v353_v3, %v1229_v0  ;;  %v1281_v4 = vrot.slane %v353_v3, %v1234_v2 }
 0x12e   :  { %v271_v21 = vmul.f32 0.02, %v237_v17  ;;  %618 = vmatmul.mubr.bf16.gmra.mrb[12].mxu1 %v317_v12  ;;  %v301_v23 = vmax.f32 %v233_v10, %v269_v16 }
 0x12f   :  { %v272_v22 = vmul.f32 0.02, %v239_v20  ;;  %v302_v25 = vmax.f32 %v235_v13, %v270_v19 }
 0x130   :  { %v303_v24 = vmax.f32 %v237_v17, %v271_v21 }
 0x131   :  { %v304_v26 = vmax.f32 %v239_v20, %v272_v22 }
 0x132   :  { %v319_v27 = vpack.c.bf16 %v303_v24, %v301_v23 }
 0x133   :  { %v320_v28 = vpack.c.bf16 %v304_v26, %v302_v25 }
 0x135   :  { %627 = vmatprep.mubr.bf16.mxu1 %v320_v28 }
 0x136   :  { %628 = vmatmul.mubr.bf16.gmra.mrb[16].mxu1 %v319_v27 }
 0x1d1   :  { %v559_v30 = vpop.f32.mrb[32].mxu0 }
 0x1d2   :  { %v560_v32 = vadd.f32 %v559_v30, %v1278_v29  ;;  %v561_v33 = vpop.f32.mrb[33].mxu0 }
 0x1d3   :  { %v562_v34 = vadd.f32 %v561_v33, %v1281_v4  ;;  %v563_v35 = vpop.f32.mrb[34].mxu0 }
 0x1d4   :  { %v638_v36 = vmul.f32 0.02, %v560_v32  ;;  %v564_v37 = vadd.f32 %v563_v35, %v1278_v29  ;;  %v565_v38 = vpop.f32.mrb[35].mxu0 }
 0x1d5   :  { %v639_v40 = vmul.f32 0.02, %v562_v34  ;;  %v566_v41 = vadd.f32 %v565_v38, %v1281_v4 }
 0x1d6   :  { %v670_v43 = vmax.f32 %v560_v32, %v638_v36  ;;  %v640_v44 = vmul.f32 0.02, %v564_v37 }
 0x1d7   :  { %v671_v45 = vmax.f32 %v562_v34, %v639_v40  ;;  %v641_v46 = vmul.f32 0.02, %v566_v41 }
 0x1d8   :  { %v672_v47 = vmax.f32 %v564_v37, %v640_v44  ;;  %v714_v48 = vmul.f32 %v1290_v39, %v670_v43 }
 0x1d9   :  { %v673_v49 = vmax.f32 %v566_v41, %v641_v46  ;;  %v569_v50 = vpop.f32.mrb[36].mxu0  ;;  %v715_v51 = vmul.f32 %v1294_v42, %v671_v45 }
 0x1da   :  { %v570_v0 = vadd.f32 %v569_v50, %v1278_v29  ;;  %v571_v52 = vpop.f32.mrb[37].mxu0  ;;  %v716_v53 = vmul.f32 %v1290_v39, %v672_v47 }
 0x1db   :  { %v572_v54 = vadd.f32 %v571_v52, %v1281_v4  ;;  %v573_v2 = vpop.f32.mrb[38].mxu0  ;;  %v746_v55 = vadd.f32 %v715_v51, %v714_v48  ;;  %v717_v56 = vmul.f32 %v1294_v42, %v673_v49 }
 0x1dc   :  { %v642_v57 = vmul.f32 0.02, %v570_v0  ;;  %v574_v58 = vadd.f32 %v573_v2, %v1278_v29  ;;  %v575_v59 = vpop.f32.mrb[39].mxu0 }
 0x1dd   :  { %v643_v60 = vmul.f32 0.02, %v572_v54  ;;  %v576_v61 = vadd.f32 %v575_v59, %v1281_v4  ;;  %747 = vadd.xlane.f32.xlu0 %v746_v55  ;;  %v749_v62 = vadd.f32 %v717_v56, %v716_v53 }
 0x1de   :  { %v674_v63 = vmax.f32 %v570_v0, %v642_v57  ;;  %v644_v1 = vmul.f32 0.02, %v574_v58 }
 0x1df   :  { %v675_v5 = vmax.f32 %v572_v54, %v643_v60  ;;  %v645_v6 = vmul.f32 0.02, %v576_v61 }
 0x1e0   :  { %v676_v7 = vmax.f32 %v574_v58, %v644_v1  ;;  %v718_v8 = vmul.f32 %v1290_v39, %v674_v63 }
 0x1e1   :  { %v677_v9 = vmax.f32 %v576_v61, %v645_v6  ;;  %v579_v10 = vpop.f32.mrb[40].mxu0  ;;  %750 = vadd.xlane.f32.xlu0 %v749_v62  ;;  %v719_v11 = vmul.f32 %v1294_v42, %v675_v5 }
 0x1e2   :  { %v580_v12 = vadd.f32 %v579_v10, %v1278_v29  ;;  %v581_v13 = vpop.f32.mrb[41].mxu0  ;;  %v720_v14 = vmul.f32 %v1290_v39, %v676_v7 }
 0x1e3   :  { %v582_v15 = vadd.f32 %v581_v13, %v1281_v4  ;;  %v583_v16 = vpop.f32.mrb[42].mxu0  ;;  %v752_v17 = vadd.f32 %v719_v11, %v718_v8  ;;  %v721_v18 = vmul.f32 %v1294_v42, %v677_v9 }
 0x1e4   :  { %v646_v19 = vmul.f32 0.02, %v580_v12  ;;  %v584_v20 = vadd.f32 %v583_v16, %v1278_v29  ;;  %v585_v21 = vpop.f32.mrb[43].mxu0 }
 0x1e5   :  { %v647_v22 = vmul.f32 0.02, %v582_v15  ;;  %v586_v23 = vadd.f32 %v585_v21, %v1281_v4  ;;  %753 = vadd.xlane.f32.xlu1 %v752_v17  ;;  %v755_v24 = vadd.f32 %v721_v18, %v720_v14 }
 0x1e6   :  { %v678_v25 = vmax.f32 %v580_v12, %v646_v19  ;;  %v648_v26 = vmul.f32 0.02, %v584_v20 }
 0x1e7   :  { %v679_v27 = vmax.f32 %v582_v15, %v647_v22  ;;  %v649_v28 = vmul.f32 0.02, %v586_v23 }
 0x1e8   :  { %v680_v3 = vmax.f32 %v584_v20, %v648_v26  ;;  %v722_v30 = vmul.f32 %v1290_v39, %v678_v25 }
 0x1e9   :  { %v681_v31 = vmax.f32 %v586_v23, %v649_v28  ;;  %v589_v32 = vpop.f32.mrb[0].mxu1  ;;  %756 = vadd.xlane.f32.xlu1 %v755_v24  ;;  %v723_v33 = vmul.f32 %v1294_v42, %v679_v27 }
 0x1ea   :  { %v590_v34 = vadd.f32 %v589_v32, %v1278_v29  ;;  %v591_v35 = vpop.f32.mrb[1].mxu1  ;;  %v724_v36 = vmul.f32 %v1290_v39, %v680_v3 }
 0x1eb   :  { %v592_v37 = vadd.f32 %v591_v35, %v1281_v4  ;;  %v593_v38 = vpop.f32.mrb[2].mxu1  ;;  %v758_v40 = vadd.f32 %v723_v33, %v722_v30  ;;  %v725_v41 = vmul.f32 %v1294_v42, %v681_v31 }
 0x1ec   :  { %v650_v43 = vmul.f32 0.02, %v590_v34  ;;  %v594_v44 = vadd.f32 %v593_v38, %v1278_v29  ;;  %v595_v45 = vpop.f32.mrb[3].mxu1 }
 0x1ed   :  { %v651_v46 = vmul.f32 0.02, %v592_v37  ;;  %v596_v47 = vadd.f32 %v595_v45, %v1281_v4  ;;  %759 = vadd.xlane.f32.xlu0 %v758_v40  ;;  %v761_v48 = vadd.f32 %v725_v41, %v724_v36 }
 0x1ee   :  { %v682_v49 = vmax.f32 %v590_v34, %v650_v43  ;;  %v652_v50 = vmul.f32 0.02, %v594_v44 }
 0x1ef   :  { %v683_v51 = vmax.f32 %v592_v37, %v651_v46  ;;  %v653_v0 = vmul.f32 0.02, %v596_v47  ;;  %762 = vadd.xlane.f32.xlu1 %v761_v48 }
 0x1f0   :  { %v684_v52 = vmax.f32 %v594_v44, %v652_v50  ;;  %v726_v53 = vmul.f32 %v1290_v39, %v682_v49 }
 0x1f1   :  { %v685_v54 = vmax.f32 %v596_v47, %v653_v0  ;;  %v599_v2 = vpop.f32.mrb[4].mxu1  ;;  %v727_v55 = vmul.f32 %v1294_v42, %v683_v51 }
 0x1f2   :  { %v600_v56 = vadd.f32 %v599_v2, %v1278_v29  ;;  %v601_v57 = vpop.f32.mrb[5].mxu1  ;;  %v728_v58 = vmul.f32 %v1290_v39, %v684_v52 }
 0x1f3   :  { %v602_v59 = vadd.f32 %v601_v57, %v1281_v4  ;;  %v603_v60 = vpop.f32.mrb[6].mxu1  ;;  %v764_v61 = vadd.f32 %v727_v55, %v726_v53  ;;  %v729_v62 = vmul.f32 %v1294_v42, %v685_v54 }
 0x1f4   :  { %v654_v63 = vmul.f32 0.02, %v600_v56  ;;  %v604_v1 = vadd.f32 %v603_v60, %v1278_v29  ;;  %v605_v5 = vpop.f32.mrb[7].mxu1 }
 0x1f5   :  { %v655_v6 = vmul.f32 0.02, %v602_v59  ;;  %v606_v7 = vadd.f32 %v605_v5, %v1281_v4  ;;  %765 = vadd.xlane.f32.xlu0 %v764_v61  ;;  %v767_v8 = vadd.f32 %v729_v62, %v728_v58 }
 0x1f6   :  { %v686_v9 = vmax.f32 %v600_v56, %v654_v63  ;;  %v656_v10 = vmul.f32 0.02, %v604_v1 }
 0x1f7   :  { %v687_v11 = vmax.f32 %v602_v59, %v655_v6  ;;  %v657_v12 = vmul.f32 0.02, %v606_v7  ;;  %768 = vadd.xlane.f32.xlu1 %v767_v8 }
 0x1f8   :  { %v688_v13 = vmax.f32 %v604_v1, %v656_v10  ;;  %v730_v14 = vmul.f32 %v1290_v39, %v686_v9 }
 0x1f9   :  { %v689_v15 = vmax.f32 %v606_v7, %v657_v12  ;;  %v609_v16 = vpop.f32.mrb[8].mxu1  ;;  %v731_v17 = vmul.f32 %v1294_v42, %v687_v11 }
 0x1fa   :  { %v610_v18 = vadd.f32 %v609_v16, %v1278_v29  ;;  %v611_v19 = vpop.f32.mrb[9].mxu1  ;;  %v732_v20 = vmul.f32 %v1290_v39, %v688_v13 }
 0x1fb   :  { %v612_v21 = vadd.f32 %v611_v19, %v1281_v4  ;;  %v613_v22 = vpop.f32.mrb[10].mxu1  ;;  %v770_v23 = vadd.f32 %v731_v17, %v730_v14  ;;  %v733_v24 = vmul.f32 %v1294_v42, %v689_v15 }
 0x1fc   :  { %v658_v25 = vmul.f32 0.02, %v610_v18  ;;  %v614_v26 = vadd.f32 %v613_v22, %v1278_v29  ;;  %v615_v27 = vpop.f32.mrb[11].mxu1 }
 0x1fd   :  { %v659_v28 = vmul.f32 0.02, %v612_v21  ;;  %v616_v3 = vadd.f32 %v615_v27, %v1281_v4  ;;  %771 = vadd.xlane.f32.xlu0 %v770_v23  ;;  %v773_v30 = vadd.f32 %v733_v24, %v732_v20 }
 0x1fe   :  { %v690_v31 = vmax.f32 %v610_v18, %v658_v25  ;;  %v660_v32 = vmul.f32 0.02, %v614_v26  ;;  %v1356_v25 = vld [vmem:[#allocation2] ss:$0 sm:$0xff] }
 0x1ff   :  { %v691_v33 = vmax.f32 %v612_v21, %v659_v28  ;;  %v661_v34 = vmul.f32 0.02, %v616_v3  ;;  %774 = vadd.xlane.f32.xlu1 %v773_v30 }
 0x200   :  { %v692_v35 = vmax.f32 %v614_v26, %v660_v32  ;;  %v734_v36 = vmul.f32 %v1290_v39, %v690_v31 }
 0x201   :  { %v693_v37 = vmax.f32 %v616_v3, %v661_v34  ;;  %v619_v38 = vpop.f32.mrb[12].mxu1  ;;  %v735_v40 = vmul.f32 %v1294_v42, %v691_v33 }
 0x202   :  { %v620_v41 = vadd.f32 %v619_v38, %v1278_v29  ;;  %v621_v43 = vpop.f32.mrb[13].mxu1  ;;  %v736_v44 = vmul.f32 %v1290_v39, %v692_v35 }
 0x203   :  { %v622_v45 = vadd.f32 %v621_v43, %v1281_v4  ;;  %v623_v46 = vpop.f32.mrb[14].mxu1  ;;  %v776_v47 = vadd.f32 %v735_v40, %v734_v36  ;;  %v737_v48 = vmul.f32 %v1294_v42, %v693_v37 }
 0x204   :  { %v662_v49 = vmul.f32 0.02, %v620_v41  ;;  %v624_v50 = vadd.f32 %v623_v46, %v1278_v29  ;;  %v625_v51 = vpop.f32.mrb[15].mxu1 }
 0x205   :  { %v663_v0 = vmul.f32 0.02, %v622_v45  ;;  %v626_v52 = vadd.f32 %v625_v51, %v1281_v4  ;;  %777 = vadd.xlane.f32.xlu0 %v776_v47  ;;  %v779_v53 = vadd.f32 %v737_v48, %v736_v44 }
 0x206   :  { %v694_v54 = vmax.f32 %v620_v41, %v662_v49  ;;  %v664_v2 = vmul.f32 0.02, %v624_v50 }
 0x207   :  { %v695_v55 = vmax.f32 %v622_v45, %v663_v0  ;;  %v665_v56 = vmul.f32 0.02, %v626_v52  ;;  %780 = vadd.xlane.f32.xlu1 %v779_v53 }
 0x208   :  { %v696_v57 = vmax.f32 %v624_v50, %v664_v2  ;;  %v738_v58 = vmul.f32 %v1290_v39, %v694_v54 }
 0x209   :  { %v697_v59 = vmax.f32 %v626_v52, %v665_v56  ;;  %v629_v60 = vpop.f32.mrb[16].mxu1  ;;  %v739_v61 = vmul.f32 %v1294_v42, %v695_v55 }
 0x20a   :  { %v630_v62 = vadd.f32 %v629_v60, %v1278_v29  ;;  %v631_v63 = vpop.f32.mrb[17].mxu1  ;;  %v740_v1 = vmul.f32 %v1290_v39, %v696_v57 }
 0x20b   :  { %v632_v5 = vadd.f32 %v631_v63, %v1281_v4  ;;  %v633_v6 = vpop.f32.mrb[18].mxu1  ;;  %v782_v7 = vadd.f32 %v739_v61, %v738_v58  ;;  %v741_v8 = vmul.f32 %v1294_v42, %v697_v59 }
 0x20c   :  { %v666_v9 = vmul.f32 0.02, %v630_v62  ;;  %v634_v10 = vadd.f32 %v633_v6, %v1278_v29  ;;  %v635_v11 = vpop.f32.mrb[19].mxu1 }
 0x20d   :  { %v667_v12 = vmul.f32 0.02, %v632_v5  ;;  %v636_v13 = vadd.f32 %v635_v11, %v1281_v4  ;;  %783 = vadd.xlane.f32.xlu0 %v782_v7  ;;  %v785_v14 = vadd.f32 %v741_v8, %v740_v1 }
 0x20e   :  { %v698_v15 = vmax.f32 %v630_v62, %v666_v9  ;;  %v668_v16 = vmul.f32 0.02, %v634_v10 }
 0x20f   :  { %v699_v17 = vmax.f32 %v632_v5, %v667_v12  ;;  %v669_v18 = vmul.f32 0.02, %v636_v13  ;;  %786 = vadd.xlane.f32.xlu1 %v785_v14 }
 0x210   :  { %v700_v19 = vmax.f32 %v634_v10, %v668_v16  ;;  %v742_v20 = vmul.f32 %v1290_v39, %v698_v15 }
 0x211   :  { %v701_v21 = vmax.f32 %v636_v13, %v669_v18  ;;  %v743_v22 = vmul.f32 %v1294_v42, %v699_v17 }
 0x212   :  { %v744_v23 = vmul.f32 %v1290_v39, %v700_v19 }
 0x213   :  { %v788_v29 = vadd.f32 %v743_v22, %v742_v20  ;;  %v745_v24 = vmul.f32 %v1294_v42, %v701_v21 }
 0x215   :  { %789 = vadd.xlane.f32.xlu0 %v788_v29  ;;  %v791_v4 = vadd.f32 %v745_v24, %v744_v23 }
 0x217   :  { %792 = vadd.xlane.f32.xlu1 %v791_v4 }
 0x26a   :  { %v748_v26 = vpop.xlane.xlu0 %747 }
 0x26b   :  { %v801_v27 = vadd.f32 %v1356_v25, %v748_v26 }
 0x26d   :  { %v817_v28 = vmul.f32 0.5, %v801_v27 }
 0x26e   :  { %v751_v3 = vpop.xlane.xlu0 %750 }
 0x26f   :  { %1038 = vtanh.f32 %v817_v28  ;;  %v802_v30 = vadd.f32 %v1356_v25, %v751_v3 }
 0x271   :  { %v818_v31 = vmul.f32 0.5, %v802_v30 }
 0x272   :  { %v754_v32 = vpop.xlane.xlu1 %753 }
 0x273   :  { %1040 = vtanh.f32 %v818_v31  ;;  %v803_v39 = vadd.f32 %v1356_v25, %v754_v32 }
 0x275   :  { %v819_v33 = vmul.f32 0.5, %v803_v39 }
 0x276   :  { %v757_v42 = vpop.xlane.xlu1 %756 }
 0x277   :  { %1042 = vtanh.f32 %v819_v33  ;;  %v804_v34 = vadd.f32 %v1356_v25, %v757_v42 }
 0x279   :  { %v1039_v35 = vpop.eup %1038  ;;  %v820_v36 = vmul.f32 0.5, %v804_v34 }
 0x27a   :  { %v849_v37 = vadd.f32 1.0, %v1039_v35  ;;  %v760_v38 = vpop.xlane.xlu0 %759 }
 0x27b   :  { %1044 = vtanh.f32 %v820_v36  ;;  %v805_v40 = vadd.f32 %v1356_v25, %v760_v38 }
 0x27c   :  { %v865_v41 = vmul.f32 0.5, %v849_v37  ;;  %v763_v43 = vpop.xlane.xlu1 %762 }
 0x27d   :  { %v1041_v44 = vpop.eup %1040  ;;  %v821_v45 = vmul.f32 0.5, %v805_v40  ;;  %v806_v46 = vadd.f32 %v1356_v25, %v763_v43 }
 0x27e   :  { %882 = vst.msk [vmem:[%s1445_s7] sm:$0xff] %vm881_vm1, %v865_v41  ;;  %v850_v47 = vadd.f32 1.0, %v1041_v44 }
 0x27f   :  { %1046 = vtanh.f32 %v821_v45  ;;  %v822_v48 = vmul.f32 0.5, %v806_v46 }
 0x280   :  { %v866_v49 = vmul.f32 0.5, %v850_v47 }
 0x281   :  { %v1043_v50 = vpop.eup %1042  ;;  %1048 = vtanh.f32 %v822_v48 }
 0x282   :  { %883 = vst.msk [vmem:[%s1445_s7 + $0x8] sm:$0xff] %vm881_vm1, %v866_v49  ;;  %v851_v51 = vadd.f32 1.0, %v1043_v50  ;;  %v766_v0 = vpop.xlane.xlu0 %765 }
 0x283   :  { %v807_v52 = vadd.f32 %v1356_v25, %v766_v0 }
 0x284   :  { %v867_v53 = vmul.f32 0.5, %v851_v51  ;;  %v769_v54 = vpop.xlane.xlu1 %768 }
 0x285   :  { %v1045_v2 = vpop.eup %1044  ;;  %v823_v55 = vmul.f32 0.5, %v807_v52  ;;  %v808_v56 = vadd.f32 %v1356_v25, %v769_v54 }
 0x286   :  { %884 = vst.msk [vmem:[%s1445_s7 + $0x10] sm:$0xff] %vm881_vm1, %v867_v53  ;;  %v852_v57 = vadd.f32 1.0, %v1045_v2 }
 0x287   :  { %1050 = vtanh.f32 %v823_v55  ;;  %v824_v58 = vmul.f32 0.5, %v808_v56 }
 0x288   :  { %v868_v59 = vmul.f32 0.5, %v852_v57 }
 0x289   :  { %v1047_v60 = vpop.eup %1046  ;;  %1052 = vtanh.f32 %v824_v58 }
 0x28a   :  { %885 = vst.msk [vmem:[%s1445_s7 + $0x18] sm:$0xff] %vm881_vm1, %v868_v59  ;;  %v853_v61 = vadd.f32 1.0, %v1047_v60  ;;  %v772_v62 = vpop.xlane.xlu0 %771 }
 0x28b   :  { %v1049_v63 = vpop.eup %1048  ;;  %v809_v1 = vadd.f32 %v1356_v25, %v772_v62 }
 0x28c   :  { %v869_v5 = vmul.f32 0.5, %v853_v61  ;;  %v854_v6 = vadd.f32 1.0, %v1049_v63  ;;  %v775_v7 = vpop.xlane.xlu1 %774 }
 0x28d   :  { %v825_v8 = vmul.f32 0.5, %v809_v1  ;;  %v810_v9 = vadd.f32 %v1356_v25, %v775_v7 }
 0x28e   :  { %886 = vst.msk [vmem:[%s1445_s7 + $0x20] sm:$0xff] %vm881_vm1, %v869_v5  ;;  %v870_v10 = vmul.f32 0.5, %v854_v6 }
 0x28f   :  { %1054 = vtanh.f32 %v825_v8  ;;  %v826_v11 = vmul.f32 0.5, %v810_v9 }
 0x290   :  { %887 = vst.msk [vmem:[%s1445_s7 + $0x28] sm:$0xff] %vm881_vm1, %v870_v10 }
 0x291   :  { %v1051_v12 = vpop.eup %1050  ;;  %1056 = vtanh.f32 %v826_v11 }
 0x292   :  { %v855_v13 = vadd.f32 1.0, %v1051_v12  ;;  %v778_v14 = vpop.xlane.xlu0 %777 }
 0x293   :  { %v1053_v15 = vpop.eup %1052  ;;  %v811_v16 = vadd.f32 %v1356_v25, %v778_v14 }
 0x294   :  { %v871_v17 = vmul.f32 0.5, %v855_v13  ;;  %v856_v18 = vadd.f32 1.0, %v1053_v15  ;;  %v781_v19 = vpop.xlane.xlu1 %780 }
 0x295   :  { %v827_v20 = vmul.f32 0.5, %v811_v16  ;;  %v812_v21 = vadd.f32 %v1356_v25, %v781_v19 }
 0x296   :  { %888 = vst.msk [vmem:[%s1445_s7 + $0x30] sm:$0xff] %vm881_vm1, %v871_v17  ;;  %v872_v22 = vmul.f32 0.5, %v856_v18 }
 0x297   :  { %1058 = vtanh.f32 %v827_v20  ;;  %v828_v23 = vmul.f32 0.5, %v812_v21 }
 0x298   :  { %889 = vst.msk [vmem:[%s1445_s7 + $0x38] sm:$0xff] %vm881_vm1, %v872_v22 }
 0x299   :  { %v1055_v29 = vpop.eup %1054  ;;  %1060 = vtanh.f32 %v828_v23 }
 0x29a   :  { %v857_v24 = vadd.f32 1.0, %v1055_v29  ;;  %v784_v4 = vpop.xlane.xlu0 %783 }
 0x29b   :  { %v1057_v26 = vpop.eup %1056  ;;  %v813_v27 = vadd.f32 %v1356_v25, %v784_v4 }
 0x29c   :  { %v873_v28 = vmul.f32 0.5, %v857_v24  ;;  %v858_v3 = vadd.f32 1.0, %v1057_v26  ;;  %v787_v30 = vpop.xlane.xlu1 %786 }
 0x29d   :  { %v829_v31 = vmul.f32 0.5, %v813_v27  ;;  %v814_v32 = vadd.f32 %v1356_v25, %v787_v30 }
 0x29e   :  { %890 = vst.msk [vmem:[%s1445_s7 + $0x40] sm:$0xff] %vm881_vm1, %v873_v28  ;;  %v874_v39 = vmul.f32 0.5, %v858_v3 }
 0x29f   :  { %1062 = vtanh.f32 %v829_v31  ;;  %v830_v33 = vmul.f32 0.5, %v814_v32 }
 0x2a0   :  { %891 = vst.msk [vmem:[%s1445_s7 + $0x48] sm:$0xff] %vm881_vm1, %v874_v39 }
 0x2a1   :  { %v1059_v42 = vpop.eup %1058  ;;  %1064 = vtanh.f32 %v830_v33 }
 0x2a2   :  { %v859_v34 = vadd.f32 1.0, %v1059_v42  ;;  %v790_v35 = vpop.xlane.xlu0 %789 }
 0x2a3   :  { %v1061_v36 = vpop.eup %1060  ;;  %v815_v37 = vadd.f32 %v1356_v25, %v790_v35 }
 0x2a4   :  { %v875_v38 = vmul.f32 0.5, %v859_v34  ;;  %v860_v40 = vadd.f32 1.0, %v1061_v36  ;;  %v793_v41 = vpop.xlane.xlu1 %792 }
 0x2a5   :  { %v831_v43 = vmul.f32 0.5, %v815_v37  ;;  %v816_v44 = vadd.f32 %v1356_v25, %v793_v41 }
 0x2a6   :  { %892 = vst.msk [vmem:[%s1445_s7 + $0x50] sm:$0xff] %vm881_vm1, %v875_v38  ;;  %v876_v45 = vmul.f32 0.5, %v860_v40 }
 0x2a7   :  { %1066 = vtanh.f32 %v831_v43  ;;  %v832_v46 = vmul.f32 0.5, %v816_v44 }
 0x2a8   :  { %893 = vst.msk [vmem:[%s1445_s7 + $0x58] sm:$0xff] %vm881_vm1, %v876_v45 }
 0x2a9   :  { %v1063_v47 = vpop.eup %1062  ;;  %1068 = vtanh.f32 %v832_v46 }
 0x2aa   :  { %v861_v48 = vadd.f32 1.0, %v1063_v47 }
 0x2ab   :  { %v1065_v49 = vpop.eup %1064 }
 0x2ac   :  { %v877_v50 = vmul.f32 0.5, %v861_v48  ;;  %v862_v51 = vadd.f32 1.0, %v1065_v49 }
 0x2ae   :  { %894 = vst.msk [vmem:[%s1445_s7 + $0x60] sm:$0xff] %vm881_vm1, %v877_v50  ;;  %v878_v25 = vmul.f32 0.5, %v862_v51 }
 0x2b0   :  { %895 = vst.msk [vmem:[%s1445_s7 + $0x68] sm:$0xff] %vm881_vm1, %v878_v25 }
 0x2b1   :  { %v1067_v0 = vpop.eup %1066 }
 0x2b2   :  { %v863_v52 = vadd.f32 1.0, %v1067_v0 }
 0x2b3   :  { %v1069_v53 = vpop.eup %1068 }
 0x2b4   :  { %v879_v54 = vmul.f32 0.5, %v863_v52  ;;  %v864_v2 = vadd.f32 1.0, %v1069_v53 }
 0x2b6   :  { %896 = vst.msk [vmem:[%s1445_s7 + $0x70] sm:$0xff] %vm881_vm1, %v879_v54  ;;  %v880_v55 = vmul.f32 0.5, %v864_v2 }
 0x2b8   :  { %897 = vst.msk [vmem:[%s1445_s7 + $0x78] sm:$0xff] %vm881_vm1, %v880_v55 }
 0x2b9   :  { %902 = vsyncpa [#allocation4], 1 }

</bundles_post_ra>
